<compile_context>
chip_gen: v6e
topology: v6e:2x2x1
jax: 0.10.0
libtpu: 0.0.40
codegen_flags: <defaults>
</compile_context>

<pallas_src>
import functools

import numpy as np
import jax
import jax.numpy as jnp
from jax.experimental import pallas as pl
from jax.experimental.pallas import tpu as pltpu

_TS_MAX = 512   # max sublane rows per block -> block = 3*512*128*4B = 768 KB


# -------------------- kernel 1: NaN-masked per-channel partial stats --------------------
def _stats_kernel(x_ref, sum_ref, sq_ref, cnt_ref, *, mt, ts, needs_mask):
    t = pl.program_id(1)

    @pl.when(t == 0)
    def _():
        sum_ref[...] = jnp.zeros_like(sum_ref)
        sq_ref[...] = jnp.zeros_like(sq_ref)
        cnt_ref[...] = jnp.zeros_like(cnt_ref)

    x = x_ref[...].astype(jnp.float32)            # (3, TS, 128)
    valid = x == x                                # not-NaN
    if needs_mask:
        # mask rows past the true extent (ragged last tile)
        rows = jax.lax.broadcasted_iota(jnp.int32, (ts, 128), 0) + t * ts
        valid = jnp.logical_and(valid, (rows < mt)[None, :, :])

    xz = jnp.where(valid, x, 0.0)
    v = valid.astype(jnp.float32)

    # Lane-dense (3, 128) accumulators resident in VMEM across the tile axis.
    sum_ref[...] += jnp.sum(xz, axis=1)           # (3, 128)
    sq_ref[...] += jnp.sum(xz * xz, axis=1)       # (3, 128)
    cnt_ref[...] += jnp.sum(v, axis=1)            # (3, 128)


# -------------------- kernel 2: normalize + fill NaNs --------------------
def _norm_kernel(x_ref, mean_ref, inv_ref, o_ref):
    x = x_ref[...].astype(jnp.float32)            # (3, TS, 128)
    y = (x - mean_ref[...]) * inv_ref[...]        # mean/inv are (3, 1, 128)
    # fill_nans is applied to the normalized result (mirrors torch ordering)
    o_ref[...] = jnp.where(y == y, y, 0.0).astype(o_ref.dtype)


def preprocessing(x):
    """x: any shape (B, 3, ...) reshapable to (B, 3, M). Returns (B, M, 3) float32."""
    B = x.shape[0]
    x3 = x.reshape(B, 3, -1)                      # (B, 3, M) -- free reshape
    M = x3.shape[-1]

    # Pad positions to a multiple of 128 only if needed (NaN pad => no effect
    # on stats, zero-filled in the output, sliced off at the end).
    Mp = ((M + 127) // 128) * 128
    if Mp != M:
        x3 = jnp.pad(x3, ((0, 0), (0, 0), (0, Mp - M)), constant_values=jnp.nan)
    Mt = Mp // 128
    x4 = x3.reshape(B, 3, Mt, 128)                # free reshape (contiguous)

    # Block sublane-rows: full extent when small (always legal: equals array dim),
    # otherwise 512 (multiple of 8) with an in-kernel mask for the ragged tail.
    TS = Mt if Mt <= _TS_MAX else _TS_MAX
    nT = pl.cdiv(Mt, TS)
    needs_mask = (nT * TS) != Mt

    stats_kernel = functools.partial(
        _stats_kernel, mt=Mt, ts=TS, needs_mask=needs_mask)

    # ---- pass 1: per-batch, lane-resident partial sum / sumsq / count ----
    sums, sqs, cnts = pl.pallas_call(
        stats_kernel,
        out_shape=(
            jax.ShapeDtypeStruct((B, 3, 128), jnp.float32),
            jax.ShapeDtypeStruct((B, 3, 128), jnp.float32),
            jax.ShapeDtypeStruct((B, 3, 128), jnp.float32),
        ),
        grid_spec=pltpu.PrefetchScalarGridSpec(
            num_scalar_prefetch=0,
            grid=(B, nT),
            in_specs=[pl.BlockSpec((None, 3, TS, 128), lambda b, t: (b, 0, t, 0))],
            out_specs=(
                pl.BlockSpec((None, 3, 128), lambda b, t: (b, 0, 0)),
                pl.BlockSpec((None, 3, 128), lambda b, t: (b, 0, 0)),
                pl.BlockSpec((None, 3, 128), lambda b, t: (b, 0, 0)),
            ),
        ),
        compiler_params=pltpu.CompilerParams(
            dimension_semantics=("parallel", "arbitrary")),
    )(x4)

    # ---- tiny finalize in plain JAX (3 scalars per stat) ----
    s = jnp.sum(sums, axis=(0, 2))                # (3,)
    ss = jnp.sum(sqs, axis=(0, 2))                # (3,)
    n = jnp.sum(cnts, axis=(0, 2))                # (3,)
    mean = s / n
    var = jnp.maximum(ss / n - mean * mean, 0.0)  # population variance (unbiased=False)
    inv_std = jax.lax.rsqrt(var)

    mean_b = jnp.broadcast_to(mean.reshape(3, 1, 1), (3, 1, 128)).astype(jnp.float32)
    inv_b = jnp.broadcast_to(inv_std.reshape(3, 1, 1), (3, 1, 128)).astype(jnp.float32)

    # ---- pass 2: (x - mean) * inv_std, NaN -> 0 ----
    y4 = pl.pallas_call(
        _norm_kernel,
        out_shape=jax.ShapeDtypeStruct((B, 3, Mt, 128), jnp.float32),
        grid_spec=pltpu.PrefetchScalarGridSpec(
            num_scalar_prefetch=0,
            grid=(B, nT),
            in_specs=[
                pl.BlockSpec((None, 3, TS, 128), lambda b, t: (b, 0, t, 0)),
                pl.BlockSpec((3, 1, 128), lambda b, t: (0, 0, 0)),
                pl.BlockSpec((3, 1, 128), lambda b, t: (0, 0, 0)),
            ],
            out_specs=pl.BlockSpec((None, 3, TS, 128), lambda b, t: (b, 0, t, 0)),
        ),
        compiler_params=pltpu.CompilerParams(
            dimension_semantics=("parallel", "parallel")),
    )(x4, mean_b, inv_b)

    # layout glue back to torch's (B, M, 3) output (unavoidable relayout since
    # the torch output has channels last).
    y3 = y4.reshape(B, 3, Mp)[:, :, :M]           # (B, 3, M)
    return jnp.transpose(y3, (0, 2, 1))           # (B, M, 3)


if __name__ == "__main__":
    # Small example: x of shape (2, 3, 16, 16) -> (B=2, M=256, 3)
    key = jax.random.PRNGKey(0)
    k_x, k_m = jax.random.split(key)
    B, H, W = 2, 16, 16
    x = jax.random.normal(k_x, (B, 3, H, W), dtype=jnp.float32) * 2.0 + 0.5

    # NaN-out ~15% of landmark positions (all 3 channels together)
    nan_pos = jax.random.bernoulli(k_m, p=0.15, shape=(B, 1, H, W))
    x = jnp.where(nan_pos, jnp.nan, x)

    fn = jax.jit(preprocessing)
    out = fn(x)
    out = jax.block_until_ready(out)

    # numpy reference (mirrors the torch code under whole-triple NaNs)
    x_np = np.asarray(x)
    xr = x_np.reshape(B, 3, -1).transpose(0, 2, 1)           # (B, M, 3)
    flat = xr.reshape(-1, 3)
    nonan = flat[~np.isnan(flat[:, 0])]
    mu = nonan.mean(0)
    sd = nonan.std(0)                                        # unbiased=False
    ref = (xr - mu[None, None, :]) / sd[None, None, :]
    ref[np.isnan(ref)] = 0.0

    assert out.shape == (B, H * W, 3)
    np.testing.assert_allclose(np.asarray(out), ref, rtol=1e-5, atol=1e-5)
    print("KERNEL_OK")
</pallas_src>

<mosaic_0001>
module attributes {stable_mosaic.version = 11 : i64} {
  func.func @_stats_kernel(%arg0: i32, %arg1: i32, %arg2: memref<1x3x2x128xf32, #tpu.memory_space<vmem>>, %arg3: memref<1x3x128xf32, #tpu.memory_space<vmem>>, %arg4: memref<1x3x128xf32, #tpu.memory_space<vmem>>, %arg5: memref<1x3x128xf32, #tpu.memory_space<vmem>>) attributes {dimension_semantics = [#tpu.dimension_semantics<parallel>, #tpu.dimension_semantics<arbitrary>], iteration_bounds = array<i64: 2, 1>, scalar_prefetch = 0 : i64, scratch_operands = 0 : i64, tpu.core_type = #tpu.core_type<tc>, window_params = [{transform_indices = @transform_0, window_bounds = array<i64: 1, 3, 2, 128>}, {transform_indices = @transform_1, window_bounds = array<i64: 1, 3, 128>}, {transform_indices = @transform_2, window_bounds = array<i64: 1, 3, 128>}, {transform_indices = @transform_3, window_bounds = array<i64: 1, 3, 128>}]} {
    %c0_i32 = arith.constant 0 : i32
    %0 = arith.cmpi eq, %arg1, %c0_i32 : i32
    %1 = arith.extui %0 : i1 to i32
    %c0_i32_0 = arith.constant 0 : i32
    %2 = arith.cmpi ne, %1, %c0_i32_0 : i32
    scf.if %2 {
      %cst_25 = arith.constant 0.000000e+00 : f32
      %32 = vector.broadcast %cst_25 : f32 to vector<3x128xf32>
      %c0_26 = arith.constant 0 : index
      %c0_27 = arith.constant 0 : index
      %c0_28 = arith.constant 0 : index
      %33 = vector.load %arg3[%c0_26, %c0_27, %c0_28] : memref<1x3x128xf32, #tpu.memory_space<vmem>>, vector<1x3x128xf32>
      %34 = vector.shape_cast %33 : vector<1x3x128xf32> to vector<3x128xf32>
      %35 = vector.shape_cast %32 : vector<3x128xf32> to vector<1x3x128xf32>
      tpu.vector_store %arg3[%c0_26, %c0_27, %c0_28], %35 {strides = array<i32>} : memref<1x3x128xf32, #tpu.memory_space<vmem>>, vector<1x3x128xf32>,
      %cst_29 = arith.constant 0.000000e+00 : f32
      %36 = vector.broadcast %cst_29 : f32 to vector<3x128xf32>
      %c0_30 = arith.constant 0 : index
      %c0_31 = arith.constant 0 : index
      %c0_32 = arith.constant 0 : index
      %37 = vector.load %arg4[%c0_30, %c0_31, %c0_32] : memref<1x3x128xf32, #tpu.memory_space<vmem>>, vector<1x3x128xf32>
      %38 = vector.shape_cast %37 : vector<1x3x128xf32> to vector<3x128xf32>
      %39 = vector.shape_cast %36 : vector<3x128xf32> to vector<1x3x128xf32>
      tpu.vector_store %arg4[%c0_30, %c0_31, %c0_32], %39 {strides = array<i32>} : memref<1x3x128xf32, #tpu.memory_space<vmem>>, vector<1x3x128xf32>,
      %cst_33 = arith.constant 0.000000e+00 : f32
      %40 = vector.broadcast %cst_33 : f32 to vector<3x128xf32>
      %c0_34 = arith.constant 0 : index
      %c0_35 = arith.constant 0 : index
      %c0_36 = arith.constant 0 : index
      %41 = vector.load %arg5[%c0_34, %c0_35, %c0_36] : memref<1x3x128xf32, #tpu.memory_space<vmem>>, vector<1x3x128xf32>
      %42 = vector.shape_cast %41 : vector<1x3x128xf32> to vector<3x128xf32>
      %43 = vector.shape_cast %40 : vector<3x128xf32> to vector<1x3x128xf32>
      tpu.vector_store %arg5[%c0_34, %c0_35, %c0_36], %43 {strides = array<i32>} : memref<1x3x128xf32, #tpu.memory_space<vmem>>, vector<1x3x128xf32>,
    } else {
    }
    %c0 = arith.constant 0 : index
    %c0_1 = arith.constant 0 : index
    %c0_2 = arith.constant 0 : index
    %c0_3 = arith.constant 0 : index
    %3 = vector.load %arg2[%c0, %c0_1, %c0_2, %c0_3] : memref<1x3x2x128xf32, #tpu.memory_space<vmem>>, vector<1x3x2x128xf32>
    %4 = vector.shape_cast %3 : vector<1x3x2x128xf32> to vector<3x2x128xf32>
    %5 = arith.cmpf oeq, %4, %4 : vector<3x2x128xf32>
    %cst = arith.constant 0.000000e+00 : f32
    %6 = vector.broadcast %cst : f32 to vector<3x2x128xf32>
    %7 = arith.select %5, %4, %6 : vector<3x2x128xi1>, vector<3x2x128xf32>
    %8 = arith.extui %5 : vector<3x2x128xi1> to vector<3x2x128xi32>
    %9 = arith.sitofp %8 : vector<3x2x128xi32> to vector<3x2x128xf32>
    %c0_4 = arith.constant 0 : index
    %c0_5 = arith.constant 0 : index
    %c0_6 = arith.constant 0 : index
    %10 = vector.load %arg3[%c0_4, %c0_5, %c0_6] : memref<1x3x128xf32, #tpu.memory_space<vmem>>, vector<1x3x128xf32>
    %11 = vector.shape_cast %10 : vector<1x3x128xf32> to vector<3x128xf32>
    %cst_7 = arith.constant dense<0.000000e+00> : vector<3x128xf32>
    %12 = vector.multi_reduction <add>, %7, %cst_7 [1] : vector<3x2x128xf32> to vector<3x128xf32>
    %13 = arith.addf %11, %12 : vector<3x128xf32>
    %c0_8 = arith.constant 0 : index
    %c0_9 = arith.constant 0 : index
    %c0_10 = arith.constant 0 : index
    %14 = vector.load %arg3[%c0_8, %c0_9, %c0_10] : memref<1x3x128xf32, #tpu.memory_space<vmem>>, vector<1x3x128xf32>
    %15 = vector.shape_cast %14 : vector<1x3x128xf32> to vector<3x128xf32>
    %16 = vector.shape_cast %13 : vector<3x128xf32> to vector<1x3x128xf32>
    tpu.vector_store %arg3[%c0_8, %c0_9, %c0_10], %16 {strides = array<i32>} : memref<1x3x128xf32, #tpu.memory_space<vmem>>, vector<1x3x128xf32>,
    %c0_11 = arith.constant 0 : index
    %c0_12 = arith.constant 0 : index
    %c0_13 = arith.constant 0 : index
    %17 = vector.load %arg4[%c0_11, %c0_12, %c0_13] : memref<1x3x128xf32, #tpu.memory_space<vmem>>, vector<1x3x128xf32>
    %18 = vector.shape_cast %17 : vector<1x3x128xf32> to vector<3x128xf32>
    %19 = arith.mulf %7, %7 : vector<3x2x128xf32>
    %cst_14 = arith.constant dense<0.000000e+00> : vector<3x128xf32>
    %20 = vector.multi_reduction <add>, %19, %cst_14 [1] : vector<3x2x128xf32> to vector<3x128xf32>
    %21 = arith.addf %18, %20 : vector<3x128xf32>
    %c0_15 = arith.constant 0 : index
    %c0_16 = arith.constant 0 : index
    %c0_17 = arith.constant 0 : index
    %22 = vector.load %arg4[%c0_15, %c0_16, %c0_17] : memref<1x3x128xf32, #tpu.memory_space<vmem>>, vector<1x3x128xf32>
    %23 = vector.shape_cast %22 : vector<1x3x128xf32> to vector<3x128xf32>
    %24 = vector.shape_cast %21 : vector<3x128xf32> to vector<1x3x128xf32>
    tpu.vector_store %arg4[%c0_15, %c0_16, %c0_17], %24 {strides = array<i32>} : memref<1x3x128xf32, #tpu.memory_space<vmem>>, vector<1x3x128xf32>,
    %c0_18 = arith.constant 0 : index
    %c0_19 = arith.constant 0 : index
    %c0_20 = arith.constant 0 : index
    %25 = vector.load %arg5[%c0_18, %c0_19, %c0_20] : memref<1x3x128xf32, #tpu.memory_space<vmem>>, vector<1x3x128xf32>
    %26 = vector.shape_cast %25 : vector<1x3x128xf32> to vector<3x128xf32>
    %cst_21 = arith.constant dense<0.000000e+00> : vector<3x128xf32>
    %27 = vector.multi_reduction <add>, %9, %cst_21 [1] : vector<3x2x128xf32> to vector<3x128xf32>
    %28 = arith.addf %26, %27 : vector<3x128xf32>
    %c0_22 = arith.constant 0 : index
    %c0_23 = arith.constant 0 : index
    %c0_24 = arith.constant 0 : index
    %29 = vector.load %arg5[%c0_22, %c0_23, %c0_24] : memref<1x3x128xf32, #tpu.memory_space<vmem>>, vector<1x3x128xf32>
    %30 = vector.shape_cast %29 : vector<1x3x128xf32> to vector<3x128xf32>
    %31 = vector.shape_cast %28 : vector<3x128xf32> to vector<1x3x128xf32>
    tpu.vector_store %arg5[%c0_22, %c0_23, %c0_24], %31 {strides = array<i32>} : memref<1x3x128xf32, #tpu.memory_space<vmem>>, vector<1x3x128xf32>,
    return
  }
  func.func @transform_0(%arg0: i32, %arg1: i32) -> (i32, i32, i32, i32) {
    %c0_i32 = arith.constant 0 : i32
    %c0_i32_0 = arith.constant 0 : i32
    %c0_i32_1 = arith.constant 0 : i32
    return %arg0, %c0_i32, %arg1, %c0_i32_0 : i32, i32, i32, i32
  }
  func.func @transform_1(%arg0: i32, %arg1: i32) -> (i32, i32, i32) {
    %c0_i32 = arith.constant 0 : i32
    %c0_i32_0 = arith.constant 0 : i32
    %c0_i32_1 = arith.constant 0 : i32
    return %arg0, %c0_i32, %c0_i32_0 : i32, i32, i32
  }
  func.func @transform_2(%arg0: i32, %arg1: i32) -> (i32, i32, i32) {
    %c0_i32 = arith.constant 0 : i32
    %c0_i32_0 = arith.constant 0 : i32
    %c0_i32_1 = arith.constant 0 : i32
    return %arg0, %c0_i32, %c0_i32_0 : i32, i32, i32
  }
  func.func @transform_3(%arg0: i32, %arg1: i32) -> (i32, i32, i32) {
    %c0_i32 = arith.constant 0 : i32
    %c0_i32_0 = arith.constant 0 : i32
    %c0_i32_1 = arith.constant 0 : i32
    return %arg0, %c0_i32, %c0_i32_0 : i32, i32, i32
  }
}

module attributes {stable_mosaic.version = 11 : i64} {
  func.func @_norm_kernel(%arg0: i32, %arg1: i32, %arg2: memref<1x3x2x128xf32, #tpu.memory_space<vmem>>, %arg3: memref<3x1x128xf32, #tpu.memory_space<vmem>>, %arg4: memref<3x1x128xf32, #tpu.memory_space<vmem>>, %arg5: memref<1x3x2x128xf32, #tpu.memory_space<vmem>>) attributes {dimension_semantics = [#tpu.dimension_semantics<parallel>, #tpu.dimension_semantics<parallel>], iteration_bounds = array<i64: 2, 1>, scalar_prefetch = 0 : i64, scratch_operands = 0 : i64, tpu.core_type = #tpu.core_type<tc>, window_params = [{transform_indices = @transform_0, window_bounds = array<i64: 1, 3, 2, 128>}, {pipeline_mode = #tpu.pipeline_mode<synchronous>, transform_indices = @transform_1, window_bounds = array<i64: 3, 1, 128>}, {pipeline_mode = #tpu.pipeline_mode<synchronous>, transform_indices = @transform_2, window_bounds = array<i64: 3, 1, 128>}, {transform_indices = @transform_3, window_bounds = array<i64: 1, 3, 2, 128>}]} {
    %c0 = arith.constant 0 : index
    %c0_0 = arith.constant 0 : index
    %c0_1 = arith.constant 0 : index
    %c0_2 = arith.constant 0 : index
    %0 = vector.load %arg2[%c0, %c0_0, %c0_1, %c0_2] : memref<1x3x2x128xf32, #tpu.memory_space<vmem>>, vector<1x3x2x128xf32>
    %1 = vector.shape_cast %0 : vector<1x3x2x128xf32> to vector<3x2x128xf32>
    %c0_3 = arith.constant 0 : index
    %c0_4 = arith.constant 0 : index
    %c0_5 = arith.constant 0 : index
    %2 = vector.load %arg3[%c0_3, %c0_4, %c0_5] : memref<3x1x128xf32, #tpu.memory_space<vmem>>, vector<3x1x128xf32>
    %3 = vector.broadcast %2 : vector<3x1x128xf32> to vector<3x2x128xf32>
    %4 = arith.subf %1, %3 : vector<3x2x128xf32>
    %c0_6 = arith.constant 0 : index
    %c0_7 = arith.constant 0 : index
    %c0_8 = arith.constant 0 : index
    %5 = vector.load %arg4[%c0_6, %c0_7, %c0_8] : memref<3x1x128xf32, #tpu.memory_space<vmem>>, vector<3x1x128xf32>
    %6 = vector.broadcast %5 : vector<3x1x128xf32> to vector<3x2x128xf32>
    %7 = arith.mulf %4, %6 : vector<3x2x128xf32>
    %8 = arith.cmpf oeq, %7, %7 : vector<3x2x128xf32>
    %cst = arith.constant 0.000000e+00 : f32
    %9 = vector.broadcast %cst : f32 to vector<3x2x128xf32>
    %10 = arith.select %8, %7, %9 : vector<3x2x128xi1>, vector<3x2x128xf32>
    %c0_9 = arith.constant 0 : index
    %c0_10 = arith.constant 0 : index
    %c0_11 = arith.constant 0 : index
    %c0_12 = arith.constant 0 : index
    %11 = vector.load %arg5[%c0_9, %c0_10, %c0_11, %c0_12] : memref<1x3x2x128xf32, #tpu.memory_space<vmem>>, vector<1x3x2x128xf32>
    %12 = vector.shape_cast %11 : vector<1x3x2x128xf32> to vector<3x2x128xf32>
    %13 = vector.shape_cast %10 : vector<3x2x128xf32> to vector<1x3x2x128xf32>
    tpu.vector_store %arg5[%c0_9, %c0_10, %c0_11, %c0_12], %13 {strides = array<i32>} : memref<1x3x2x128xf32, #tpu.memory_space<vmem>>, vector<1x3x2x128xf32>,
    return
  }
  func.func @transform_0(%arg0: i32, %arg1: i32) -> (i32, i32, i32, i32) {
    %c0_i32 = arith.constant 0 : i32
    %c0_i32_0 = arith.constant 0 : i32
    %c0_i32_1 = arith.constant 0 : i32
    return %arg0, %c0_i32, %arg1, %c0_i32_0 : i32, i32, i32, i32
  }
  func.func @transform_1(%arg0: i32, %arg1: i32) -> (i32, i32, i32) {
    %c0_i32 = arith.constant 0 : i32
    %c0_i32_0 = arith.constant 0 : i32
    %c0_i32_1 = arith.constant 0 : i32
    %c0_i32_2 = arith.constant 0 : i32
    return %c0_i32, %c0_i32_0, %c0_i32_1 : i32, i32, i32
  }
  func.func @transform_2(%arg0: i32, %arg1: i32) -> (i32, i32, i32) {
    %c0_i32 = arith.constant 0 : i32
    %c0_i32_0 = arith.constant 0 : i32
    %c0_i32_1 = arith.constant 0 : i32
    %c0_i32_2 = arith.constant 0 : i32
    return %c0_i32, %c0_i32_0, %c0_i32_1 : i32, i32, i32
  }
  func.func @transform_3(%arg0: i32, %arg1: i32) -> (i32, i32, i32, i32) {
    %c0_i32 = arith.constant 0 : i32
    %c0_i32_0 = arith.constant 0 : i32
    %c0_i32_1 = arith.constant 0 : i32
    return %arg0, %c0_i32, %arg1, %c0_i32_0 : i32, i32, i32, i32
  }
}

</mosaic_0001>

<bundles_post_ra>
// kernel: preprocessing.2
= control target key start
LH: loop header
LB: loop body
LE: loop exit
PB: predicated region body
PF: predicated region fallthrough
CT: control target
= control target key end

     0   :  { %s545_s12 = smov 0   ;;  %s547_s13 = smov 0   ;;  %s614_s0 = inlined_call_operand.vmem [shape: f32[2,3,2,128], index: 0, kind: input, shape index: {}]   ;;  %s615_s1 = inlined_call_operand.vmem [shape: f32[2,3,128], index: 1, kind: output, shape index: {0}]   ;;  %s616_s2 = inlined_call_operand.vmem [shape: f32[2,3,128], index: 2, kind: output, shape index: {1}]   ;;  %s617_s3 = inlined_call_operand.vmem [shape: f32[2,3,128], index: 3, kind: output, shape index: {2}]  }
   0x1   :  { %s549_s14 = smov 0  }
   0x2 LB: > { %s26_s15 = sadd.s32 1, %s518_s13  ;;  %p464_p0 = scmp.ge.s32.totalorder %s522_s14, 1  ;;  %s522_s14 = sphi %s549_s14, %s14_s14   ;;  %s518_s13 = sphi %s547_s13, %s619_s13   ;;  %s514_s12 = sphi %s545_s12, %s618_s12  }
   0x3   : > { %p28_p1 = scmp.ge.s32.totalorder %s26_s15, 2  ;;  %p159_p2 = scmp.lt.s32.totalorder %s522_s14, 3 }
   0x5   : > { %s621_s15 = smov (%p28_p1, %s26_s15), 0  ;;  %p160_p3 = pnand %p464_p0, %p159_p2 }
   0x6   : > { %p193_p4 = scmp.lt.s32.totalorder (!%p160_p3), %s514_s12, 1 }
   0x7   : > { %163 = sbr.rel (%p160_p3) target bundleno = 46 (0x2e), region = 24 }
   0xc   : > { %s623_s12 = smov (!%p193_p4, %s514_s12), 1  ;;  %v524_v0 = vmov 0.0   ;;  %vm236_vm0 = vcmask 1041408   ;;  %vm261_vm4 = vcmask 1041409   ;;  %vm263_vm5 = vcmask 1042434  }
   0xd   : > { %s474_s16 = smul.u32 6, %s623_s12  ;;  %s466_s17 = sshll.u32 %s623_s12, 2 }
   0xe   : > { %s566_s20 = scalar_lea.vmem %s615_s1, %s466_s17  ;;  %s571_s23 = scalar_lea.vmem %s616_s2, %s466_s17 }
   0xf   : > { %s200_s26 = scalar_lea.vmem %s614_s0, %s474_s16  ;;  %217 = vst [vmem:[%s566_s20] sm:$0x7] %v524_v0  ;;  %218 = vst [vmem:[%s571_s23] sm:$0x7] %v524_v0  ;;  %s581_s29 = scalar_lea.vmem %s617_s3, %s466_s17 }
  0x10   : > { %v220_v1 = vld [vmem:[%s200_s26] sm:$0x3]  ;;  %v221_v2 = vld [vmem:[%s200_s26 + $0x2] sm:$0x3]  ;;  %v222_v3 = vld [vmem:[%s200_s26 + $0x4] sm:$0x3] }
  0x11   : > { %219 = vst [vmem:[%s581_s29] sm:$0x7] %v524_v0  ;;  %vm223_vm1 = vcmp.eq.f32.partialorder %v220_v1, %v220_v1  ;;  %vm224_vm2 = vcmp.eq.f32.partialorder %v221_v2, %v221_v2  ;;  %vm225_vm3 = vcmp.eq.f32.partialorder %v222_v3, %v222_v3 }
  0x12   : > { %v226_v4 = vsel %vm223_vm1, %v220_v1, 0.0  ;;  %v227_v5 = vsel %vm224_vm2, %v221_v2, 0.0  ;;  %v228_v6 = vsel %vm225_vm3, %v222_v3, 0.0  ;;  %v469_v7 = vsel %vm223_vm1, 1.0, %v524_v0 }
  0x13   : > { %v470_v8 = vsel %vm224_vm2, 1.0, %v524_v0  ;;  %v471_v9 = vsel %vm225_vm3, 1.0, %v524_v0  ;;  %v237_v10 = vsel %vm236_vm0, %v226_v4, 0.0  ;;  %v244_v11 = vsel %vm236_vm0, %v227_v5, 0.0 }
  0x14   : > { %v238_v12 = vrot.slane %v237_v10, 4  ;;  %v245_v13 = vrot.slane %v244_v11, 4  ;;  %v251_v14 = vsel %vm236_vm0, %v228_v6, 0.0  ;;  %v269_v15 = vmul.f32 %v226_v4, %v226_v4 }
  0x15   : > { %v252_v16 = vrot.slane %v251_v14, 4  ;;  %v270_v17 = vmul.f32 %v227_v5, %v227_v5  ;;  %v271_v18 = vmul.f32 %v228_v6, %v228_v6  ;;  %v302_v19 = vsel %vm236_vm0, %v469_v7, 0.0 }
  0x16   : > { %v239_v20 = vadd.f32 %v238_v12, %v237_v10  ;;  %v246_v21 = vadd.f32 %v245_v13, %v244_v11  ;;  %v272_v22 = vsel %vm236_vm0, %v269_v15, 0.0  ;;  %v303_v23 = vrot.slane %v302_v19, 4  ;;  %v235_v0 = vld [vmem:[%s566_s20] sm:$0x7] }
  0x17   : > { %v253_v24 = vadd.f32 %v252_v16, %v251_v14  ;;  %v273_v25 = vrot.slane %v272_v22, 4  ;;  %v279_v26 = vsel %vm236_vm0, %v270_v17, 0.0  ;;  %v286_v27 = vsel %vm236_vm0, %v271_v18, 0.0 }
  0x18   : > { %v240_v28 = vrot.slane %v239_v20, 2  ;;  %v247_v29 = vrot.slane %v246_v21, 2  ;;  %v280_v30 = vrot.slane %v279_v26, 4  ;;  %v287_v31 = vrot.slane %v286_v27, 4 }
  0x19   : > { %v274_v32 = vadd.f32 %v273_v25, %v272_v22  ;;  %v304_v33 = vadd.f32 %v303_v23, %v302_v19  ;;  %v309_v34 = vsel %vm236_vm0, %v470_v8, 0.0  ;;  %v316_v35 = vsel %vm236_vm0, %v471_v9, 0.0  ;;  %v268_v9 = vld [vmem:[%s571_s23] sm:$0x7] }
  0x1a   : > { %v281_v36 = vadd.f32 %v280_v30, %v279_v26  ;;  %v310_v37 = vrot.slane %v309_v34, 4  ;;  %v317_v38 = vrot.slane %v316_v35, 4  ;;  %v241_v39 = vadd.f32 %v240_v28, %v239_v20  ;;  %v301_v20 = vld [vmem:[%s581_s29] sm:$0x7] }
  0x1b   : > { %v248_v40 = vadd.f32 %v247_v29, %v246_v21  ;;  %v254_v41 = vrot.slane %v253_v24, 2  ;;  %v275_v42 = vrot.slane %v274_v32, 2  ;;  %v288_v43 = vadd.f32 %v287_v31, %v286_v27 }
  0x1c   : > { %v311_v44 = vadd.f32 %v310_v37, %v309_v34  ;;  %v242_v45 = vrot.slane %v241_v39, 1  ;;  %v282_v46 = vrot.slane %v281_v36, 2  ;;  %v305_v47 = vrot.slane %v304_v33, 2 }
  0x1d   : > { %v249_v48 = vrot.slane %v248_v40, 1  ;;  %v255_v49 = vadd.f32 %v254_v41, %v253_v24  ;;  %v276_v50 = vadd.f32 %v275_v42, %v274_v32  ;;  %v289_v51 = vrot.slane %v288_v43, 2 }
  0x1e   : > { %v243_v52 = vadd.f32 %v242_v45, %v241_v39  ;;  %v283_v53 = vadd.f32 %v282_v46, %v281_v36  ;;  %v306_v54 = vadd.f32 %v305_v47, %v304_v33  ;;  %v312_v55 = vrot.slane %v311_v44, 2 }
  0x1f   : > { %v250_v56 = vadd.f32 %v249_v48, %v248_v40  ;;  %v256_v57 = vrot.slane %v255_v49, 1  ;;  %v277_v58 = vrot.slane %v276_v50, 1  ;;  %v290_v59 = vadd.f32 %v289_v51, %v288_v43 }
  0x20   : > { %v284_v60 = vrot.slane %v283_v53, 1  ;;  %v307_v61 = vrot.slane %v306_v54, 1  ;;  %v313_v62 = vadd.f32 %v312_v55, %v311_v44  ;;  %v318_v63 = vadd.f32 %v317_v38, %v316_v35 }
  0x21   : > { %v257_v1 = vadd.f32 %v256_v57, %v255_v49  ;;  %v262_v2 = vsel %vm261_vm4, %v250_v56, %v243_v52  ;;  %v278_v3 = vadd.f32 %v277_v58, %v276_v50  ;;  %v291_v4 = vrot.slane %v290_v59, 1 }
  0x22   : > { %v285_v5 = vadd.f32 %v284_v60, %v283_v53  ;;  %v314_v6 = vrot.slane %v313_v62, 1  ;;  %v319_v7 = vrot.slane %v318_v63, 2  ;;  %v308_v11 = vadd.f32 %v307_v61, %v306_v54 }
  0x23   : > { %v264_v8 = vsel %vm263_vm5, %v257_v1, %v262_v2  ;;  %v292_v10 = vadd.f32 %v291_v4, %v290_v59 }
  0x24   : > { %v266_v12 = vadd.f32 %v264_v8, %v235_v0  ;;  %v296_v13 = vsel %vm261_vm4, %v285_v5, %v278_v3  ;;  %v315_v14 = vadd.f32 %v314_v6, %v313_v62  ;;  %v320_v15 = vadd.f32 %v319_v7, %v318_v63 }
  0x25   : > { %v297_v16 = vsel %vm263_vm5, %v292_v10, %v296_v13 }
  0x26   : > { %267 = vst [vmem:[%s566_s20] sm:$0x7] %v266_v12  ;;  %v299_v17 = vadd.f32 %v297_v16, %v268_v9  ;;  %v321_v18 = vrot.slane %v320_v15, 1  ;;  %v326_v19 = vsel %vm261_vm4, %v315_v14, %v308_v11 }
  0x28   : > { %300 = vst [vmem:[%s571_s23] sm:$0x7] %v299_v17  ;;  %v322_v21 = vadd.f32 %v321_v18, %v320_v15 }
  0x2a   : > { %v327_v22 = vsel %vm263_vm5, %v322_v21, %v326_v19 }
  0x2b   : > { %v329_v23 = vadd.f32 %v327_v22, %v301_v20 }
  0x2d   : > { %330 = vst [vmem:[%s581_s29] sm:$0x7] %v329_v23 }
  0x2e PF: > { %s14_s14 = sadd.s32 1, %s522_s14   ;;  %s618_s12 = smov %s518_s13 }
  0x2f   : > { %p11_p5 = scmp.ge.s32.totalorder %s14_s14, 4   ;;  %s619_s13 = smov %s621_s15 }
  0x31   :  { %13 = sbr.rel (!%p11_p5) target bundleno = 2 (0x2), region = 82 }

// kernel: preprocessing.3
= control target key start
LH: loop header
LB: loop body
LE: loop exit
PB: predicated region body
PF: predicated region fallthrough
CT: control target
= control target key end

     0   :  { %s429_s12 = smov 0   ;;  %s431_s13 = smov 0   ;;  %s480_s0 = inlined_call_operand.vmem [shape: f32[2,3,2,128], index: 0, kind: input, shape index: {}]   ;;  %s481_s1 = inlined_call_operand.vmem [shape: f32[3,1,128], index: 1, kind: input, shape index: {}]   ;;  %s482_s2 = inlined_call_operand.vmem [shape: f32[3,1,128], index: 2, kind: input, shape index: {}]   ;;  %s483_s3 = inlined_call_operand.vmem [shape: f32[2,3,2,128], index: 3, kind: output, shape index: {}]  }
   0x1   :  { %s433_s14 = smov 0  }
   0x2 LB: > { %s25_s15 = sadd.s32 1, %s403_s13  ;;  %p349_p0 = scmp.ge.s32.totalorder %s407_s14, 1  ;;  %s407_s14 = sphi %s433_s14, %s13_s14   ;;  %s403_s13 = sphi %s431_s13, %s485_s13   ;;  %s399_s12 = sphi %s429_s12, %s484_s12  }
   0x3   : > { %p27_p1 = scmp.ge.s32.totalorder %s25_s15, 2  ;;  %p156_p2 = scmp.lt.s32.totalorder %s407_s14, 3 }
   0x5   : > { %s487_s15 = smov (%p27_p1, %s25_s15), 0  ;;  %p157_p3 = pnand %p349_p0, %p156_p2 }
   0x6   : > { %p186_p4 = scmp.lt.s32.totalorder (!%p157_p3), %s399_s12, 1 }
   0x7   : > { %160 = sbr.rel (%p157_p3) target bundleno = 25 (0x19), region = 32 }
   0xc   : > { %s489_s12 = smov (!%p186_p4, %s399_s12), 1  ;;  %v352_v0 = vld [vmem:[%s481_s1] ss:$0 sm:$0xff]  ;;  %v353_v1 = vld [vmem:[%s481_s1 + $0x1] ss:$0 sm:$0xff] }
   0xd   : > { %s360_s16 = smul.u32 6, %s489_s12  ;;  %v354_v2 = vld [vmem:[%s481_s1 + $0x2] ss:$0 sm:$0xff]  ;;  %v355_v3 = vld [vmem:[%s482_s2] ss:$0 sm:$0xff] }
   0xe   : > { %v356_v4 = vld [vmem:[%s482_s2 + $0x1] ss:$0 sm:$0xff]  ;;  %v357_v5 = vld [vmem:[%s482_s2 + $0x2] ss:$0 sm:$0xff] }
   0xf   : > { %s193_s25 = scalar_lea.vmem %s480_s0, %s360_s16  ;;  %s201_s7 = scalar_lea.vmem %s483_s3, %s360_s16 }
  0x10   : > { %v202_v6 = vld [vmem:[%s193_s25] sm:$0x3]  ;;  %v203_v7 = vld [vmem:[%s193_s25 + $0x2] sm:$0x3]  ;;  %v204_v8 = vld [vmem:[%s193_s25 + $0x4] sm:$0x3] }
  0x11   : > { %v226_v9 = vsub.f32 %v202_v6, %v352_v0  ;;  %v227_v10 = vsub.f32 %v203_v7, %v353_v1  ;;  %v228_v11 = vsub.f32 %v204_v8, %v354_v2 }
  0x13   : > { %v250_v12 = vmul.f32 %v355_v3, %v226_v9  ;;  %v251_v13 = vmul.f32 %v356_v4, %v227_v10  ;;  %v252_v14 = vmul.f32 %v357_v5, %v228_v11 }
  0x15   : > { %vm253_vm0 = vcmp.eq.f32.partialorder %v250_v12, %v250_v12  ;;  %vm254_vm1 = vcmp.eq.f32.partialorder %v251_v13, %v251_v13  ;;  %vm255_vm2 = vcmp.eq.f32.partialorder %v252_v14, %v252_v14 }
  0x16   : > { %v256_v15 = vsel %vm253_vm0, %v250_v12, 0.0  ;;  %v257_v16 = vsel %vm254_vm1, %v251_v13, 0.0  ;;  %v258_v17 = vsel %vm255_vm2, %v252_v14, 0.0 }
  0x17   : > { %259 = vst [vmem:[%s201_s7] sm:$0x3] %v256_v15  ;;  %260 = vst [vmem:[%s201_s7 + $0x2] sm:$0x3] %v257_v16 }
  0x18   : > { %261 = vst [vmem:[%s201_s7 + $0x4] sm:$0x3] %v258_v17 }
  0x19 PF: > { %s13_s14 = sadd.s32 1, %s407_s14   ;;  %s484_s12 = smov %s403_s13 }
  0x1a   : > { %p10_p5 = scmp.ge.s32.totalorder %s13_s14, 4   ;;  %s485_s13 = smov %s487_s15 }
  0x1c   :  { %12 = sbr.rel (!%p10_p5) target bundleno = 2 (0x2), region = 62 }

</bundles_post_ra>
